<compile_context>
chip_gen: v5e
topology: v5e:2x2
jax: 0.10.0
libtpu: 0.0.40
codegen_flags: <defaults>
</compile_context>

<pallas_src>
import functools

import jax
import jax.numpy as jnp
from jax.experimental import pallas as pl
from jax.experimental.pallas import tpu as pltpu

VOCAB = 30522
EMBED_DIM = 32      # AvgPool1d(kernel=32) over the embed axis -> 1 value / token
POOL_K = 32
SEQ_LEN = 379       # fc expects 379 = SEQ_LEN * (EMBED_DIM // POOL_K)
NUM_CLASSES = 4

# The pool-fold is only exact when the pool window covers the whole embed axis.
assert EMBED_DIM == POOL_K, "AvgPool fold requires EMBED_DIM == POOL_K (== 32)"

_MIN_SPLIT = 512    # batches >= 2*_MIN_SPLIT get >= 2 grid blocks (v7x megacore)
_TB_MAX = 8192      # keeps 2x(TB*379*4 B) well under v7x's 64 MiB physical VMEM


# --------------------------------------------------------------------------- #
# Kernels
# --------------------------------------------------------------------------- #
def _fc_kernel(pooled_ref, w_ref, b_ref, out_ref):
    """pooled: (TB, 379) bf16/f32, w: (379, 4) f32, b: (1, 4) f32 -> (TB, 4)."""
    p = pooled_ref[...].astype(jnp.float32)
    out_ref[...] = (
        jnp.dot(p, w_ref[...], preferred_element_type=jnp.float32) + b_ref[...]
    )


def _fused_fc_kernel(ids_ref, table_ref, w_ref, b_ref, out_ref):
    """ids: (TB, 379) int32, table: (30522,) bf16 VMEM-resident -> (TB, 4).

    Gathers the per-token row means directly from the VMEM-resident table so
    no (B, 379) pooled intermediate ever touches HBM.
    """
    pooled = jnp.take(table_ref[...], ids_ref[...], axis=0).astype(jnp.float32)
    out_ref[...] = (
        jnp.dot(pooled, w_ref[...], preferred_element_type=jnp.float32)
        + b_ref[...]
    )


# --------------------------------------------------------------------------- #
# Parameter folding / tiling helpers
# --------------------------------------------------------------------------- #
def fold_pool_into_embedding(embed_table, dtype=jnp.bfloat16):
    """Precompute once: AvgPool1d(kernel=32) over E=32 == per-row mean.

    Stored in bf16 (review item: halves the dominant HBM stream); the matmul
    still accumulates in f32.
    """
    assert embed_table.shape == (VOCAB, EMBED_DIM)
    return jnp.mean(embed_table.astype(jnp.float32), axis=1).astype(dtype)


def _batch_tile(B, tb):
    """Pick a sublane-aligned batch tile; >=2 blocks for large single-tile B."""
    tb = max(16, min((tb // 16) * 16, _TB_MAX))
    if B >= 2 * _MIN_SPLIT:
        half = 16 * pl.cdiv(pl.cdiv(B, 2), 16)   # aligned half-batch
        return min(tb, half)                     # guarantees grid >= 2 blocks
    if B > tb:
        return tb
    return B                                      # single full-batch block


def _compiler_params(TB, stream_itemsize):
    """Parallel batch axis + a VMEM limit derived from the tile footprint."""
    tile = TB * SEQ_LEN * stream_itemsize + TB * NUM_CLASSES * 4
    resident = (VOCAB + SEQ_LEN * NUM_CLASSES + NUM_CLASSES) * 4
    # double-buffered tile with 2x headroom; clamp so the same config is legal
    # on v5e/v6e (128 MiB physical VMEM) and v7x (64 MiB physical).
    limit = int(min(max(4 * tile + 2 * resident, 32 << 20), 48 << 20))
    return pltpu.CompilerParams(
        dimension_semantics=("parallel",), vmem_limit_bytes=limit)


# --------------------------------------------------------------------------- #
# Forward paths
# --------------------------------------------------------------------------- #
@jax.jit
def _forward_xla(token_ids, row_mean, fc_w, fc_b):
    """Tiny-batch bypass: let XLA do the whole thing (no pallas_call)."""
    pooled = jnp.take(row_mean, token_ids, axis=0).astype(jnp.float32)
    return pooled @ fc_w + fc_b


@functools.partial(jax.jit, static_argnames=("TB",))
def _forward_pallas_unfused(token_ids, row_mean, fc_w, fc_b, *, TB):
    """XLA gather (4 B/token ids -> 2 B/token pooled) + Pallas matmul."""
    B = token_ids.shape[0]
    Bp = pl.cdiv(B, TB) * TB
    if Bp != B:
        # Pad the ids (a few extra row-0 gathers), not a full pooled copy.
        token_ids = jnp.pad(token_ids, ((0, Bp - B), (0, 0)))
    pooled = jnp.take(row_mean, token_ids, axis=0)            # (Bp, 379) bf16

    out = pl.pallas_call(
        _fc_kernel,
        out_shape=jax.ShapeDtypeStruct((Bp, NUM_CLASSES), jnp.float32),
        grid=(Bp // TB,),
        in_specs=[
            pl.BlockSpec((TB, SEQ_LEN), lambda i: (i, 0)),            # pooled tile
            pl.BlockSpec((SEQ_LEN, NUM_CLASSES), lambda i: (0, 0)),   # fc_w resident
            pl.BlockSpec((1, NUM_CLASSES), lambda i: (0, 0)),         # fc_b resident
        ],
        out_specs=pl.BlockSpec((TB, NUM_CLASSES), lambda i: (i, 0)),
        compiler_params=_compiler_params(TB, pooled.dtype.itemsize),
    )(pooled, fc_w, fc_b.reshape(1, NUM_CLASSES))
    return out[:B]


@functools.partial(jax.jit, static_argnames=("TB",))
def _forward_pallas_fused(token_ids, row_mean, fc_w, fc_b, *, TB):
    """Fused gather + matmul: ids tile + VMEM-resident row-mean table."""
    B = token_ids.shape[0]
    Bp = pl.cdiv(B, TB) * TB
    if Bp != B:
        token_ids = jnp.pad(token_ids, ((0, Bp - B), (0, 0)))

    out = pl.pallas_call(
        _fused_fc_kernel,
        out_shape=jax.ShapeDtypeStruct((Bp, NUM_CLASSES), jnp.float32),
        grid=(Bp // TB,),
        in_specs=[
            pl.BlockSpec((TB, SEQ_LEN), lambda i: (i, 0)),            # ids tile
            pl.BlockSpec((VOCAB,), lambda i: (0,)),                   # table resident
            pl.BlockSpec((SEQ_LEN, NUM_CLASSES), lambda i: (0, 0)),   # fc_w resident
            pl.BlockSpec((1, NUM_CLASSES), lambda i: (0, 0)),         # fc_b resident
        ],
        out_specs=pl.BlockSpec((TB, NUM_CLASSES), lambda i: (i, 0)),
        compiler_params=_compiler_params(TB, token_ids.dtype.itemsize),
    )(token_ids, row_mean, fc_w, fc_b.reshape(1, NUM_CLASSES))
    return out[:B]


_FUSED_GATHER_OK = None


def _fused_gather_supported(row_mean, fc_w, fc_b):
    """One-time probe: does Mosaic compile & correctly run the in-kernel gather?"""
    global _FUSED_GATHER_OK
    if _FUSED_GATHER_OK is None:
        try:
            ids = jax.random.randint(jax.random.PRNGKey(123), (16, SEQ_LEN),
                                     0, VOCAB, dtype=jnp.int32)
            got = jax.block_until_ready(
                _forward_pallas_fused(ids, row_mean, fc_w, fc_b, TB=16))
            want = (jnp.take(row_mean, ids, axis=0).astype(jnp.float32) @ fc_w
                    + fc_b)
            _FUSED_GATHER_OK = bool(jnp.allclose(got, want, atol=1e-3, rtol=1e-2))
        except Exception:
            _FUSED_GATHER_OK = False
    return _FUSED_GATHER_OK


def text_sentiment_forward(token_ids, row_mean, fc_w, fc_b, *,
                           tb=1024, use_pallas=None):
    """token_ids: (B, 379) int32, row_mean: (30522,) bf16 (folded table),
    fc_w: (379, 4) f32 (transposed vs PyTorch), fc_b: (4,) f32 -> (B, 4) f32."""
    B, L = token_ids.shape
    assert L == SEQ_LEN
    if use_pallas is None:
        use_pallas = B >= 64          # fixed pallas_call cost beats the tiny matmul
    if not use_pallas:
        return _forward_xla(token_ids, row_mean, fc_w, fc_b)

    TB = _batch_tile(B, tb)
    if _fused_gather_supported(row_mean, fc_w, fc_b):
        return _forward_pallas_fused(token_ids, row_mean, fc_w, fc_b, TB=TB)
    return _forward_pallas_unfused(token_ids, row_mean, fc_w, fc_b, TB=TB)


# --------------------------------------------------------------------------- #
# Pure-JAX reference mirroring the PyTorch forward exactly (f32 everywhere)
# --------------------------------------------------------------------------- #
def reference_forward(token_ids, embed_table, fc_w, fc_b):
    emb = jnp.take(embed_table, token_ids, axis=0)                      # (B, L, E)
    B, L, E = emb.shape
    pooled = emb.reshape(B, L, E // POOL_K, POOL_K).mean(axis=-1)       # (B, L, 1)
    flat = pooled.reshape(B, -1)                                        # (B, 379)
    return flat @ fc_w + fc_b                                           # (B, 4)


if __name__ == "__main__":
    key = jax.random.PRNGKey(0)
    k_ids, k_emb, k_w, k_b = jax.random.split(key, 4)

    B = 2
    token_ids = jax.random.randint(k_ids, (B, SEQ_LEN), 0, VOCAB, dtype=jnp.int32)

    # Synthetic parameters (shapes match the PyTorch module; fc_w is stored as
    # (in_features, out_features) = PyTorch weight.T).
    embed_table = jax.random.normal(k_emb, (VOCAB, EMBED_DIM), jnp.float32) * 0.02
    fc_w = (jax.random.normal(k_w, (SEQ_LEN, NUM_CLASSES), jnp.float32)
            * (1.0 / jnp.sqrt(SEQ_LEN)))
    fc_b = jax.random.normal(k_b, (NUM_CLASSES,), jnp.float32) * 0.01

    # Fold AvgPool into the embedding table once (bf16; amortized across calls).
    row_mean = fold_pool_into_embedding(embed_table)

    ATOL, RTOL = 2e-3, 2e-2   # loosened vs f32 reference because row_mean is bf16

    # 1) Pallas path forced even at B=2 so the kernel itself is exercised.
    out = jax.block_until_ready(
        text_sentiment_forward(token_ids, row_mean, fc_w, fc_b, use_pallas=True))
    ref = reference_forward(token_ids, embed_table, fc_w, fc_b)
    assert out.shape == (B, NUM_CLASSES)
    assert jnp.allclose(out, ref, atol=ATOL, rtol=RTOL), (out, ref)

    # 2) Default dispatch at tiny B takes the XLA bypass; must agree too.
    out_xla = jax.block_until_ready(
        text_sentiment_forward(token_ids, row_mean, fc_w, fc_b))
    assert jnp.allclose(out_xla, ref, atol=ATOL, rtol=RTOL), (out_xla, ref)

    # 3) Gridded + padded (ragged last tile) Pallas path, multiple blocks.
    B2 = 100
    ids2 = jax.random.randint(jax.random.PRNGKey(1), (B2, SEQ_LEN), 0, VOCAB,
                              dtype=jnp.int32)
    out2 = jax.block_until_ready(
        text_sentiment_forward(ids2, row_mean, fc_w, fc_b, tb=32))
    ref2 = reference_forward(ids2, embed_table, fc_w, fc_b)
    assert out2.shape == (B2, NUM_CLASSES)
    assert jnp.allclose(out2, ref2, atol=ATOL, rtol=RTOL), (out2, ref2)

    print("KERNEL_OK")
</pallas_src>

<mosaic_0001>
module attributes {stable_mosaic.version = 11 : i64} {
  func.func @_fc_kernel(%arg0: i32, %arg1: memref<2x379xbf16, #tpu.memory_space<vmem>>, %arg2: memref<379x4xf32, #tpu.memory_space<vmem>>, %arg3: memref<1x4xf32, #tpu.memory_space<vmem>>, %arg4: memref<2x4xf32, #tpu.memory_space<vmem>>) attributes {dimension_semantics = [#tpu.dimension_semantics<parallel>], iteration_bounds = array<i64: 1>, scalar_prefetch = 0 : i64, scratch_operands = 0 : i64, tpu.core_type = #tpu.core_type<tc>, window_params = [{transform_indices = @transform_0, window_bounds = array<i64: 2, 379>}, {pipeline_mode = #tpu.pipeline_mode<synchronous>, transform_indices = @transform_1, window_bounds = array<i64: 379, 4>}, {pipeline_mode = #tpu.pipeline_mode<synchronous>, transform_indices = @transform_2, window_bounds = array<i64: 1, 4>}, {transform_indices = @transform_3, window_bounds = array<i64: 2, 4>}]} {
    %c0 = arith.constant 0 : index
    %c0_0 = arith.constant 0 : index
    %0 = vector.load %arg1[%c0, %c0_0] : memref<2x379xbf16, #tpu.memory_space<vmem>>, vector<2x379xbf16>
    %1 = arith.extf %0 : vector<2x379xbf16> to vector<2x379xf32>
    %c0_1 = arith.constant 0 : index
    %c0_2 = arith.constant 0 : index
    %2 = vector.load %arg2[%c0_1, %c0_2] : memref<379x4xf32, #tpu.memory_space<vmem>>, vector<379x4xf32>
    %cst = arith.constant dense<0.000000e+00> : vector<2x4xf32>
    %3 = tpu.matmul %1, %2, %cst {dimension_numbers = #tpu.dot_dimension_numbers<[1], [0], [0], [1], [0, 0, 1, 1], [], []>} : vector<2x379xf32>, vector<379x4xf32>, vector<2x4xf32> -> vector<2x4xf32>
    %c0_3 = arith.constant 0 : index
    %c0_4 = arith.constant 0 : index
    %4 = vector.load %arg3[%c0_3, %c0_4] : memref<1x4xf32, #tpu.memory_space<vmem>>, vector<1x4xf32>
    %5 = vector.broadcast %4 : vector<1x4xf32> to vector<2x4xf32>
    %6 = arith.addf %3, %5 : vector<2x4xf32>
    %c0_5 = arith.constant 0 : index
    %c0_6 = arith.constant 0 : index
    %7 = vector.load %arg4[%c0_5, %c0_6] : memref<2x4xf32, #tpu.memory_space<vmem>>, vector<2x4xf32>
    tpu.vector_store %arg4[%c0_5, %c0_6], %6 {strides = array<i32>} : memref<2x4xf32, #tpu.memory_space<vmem>>, vector<2x4xf32>,
    return
  }
  func.func @transform_0(%arg0: i32) -> (i32, i32) {
    %c0_i32 = arith.constant 0 : i32
    %c0_i32_0 = arith.constant 0 : i32
    return %arg0, %c0_i32 : i32, i32
  }
  func.func @transform_1(%arg0: i32) -> (i32, i32) {
    %c0_i32 = arith.constant 0 : i32
    %c0_i32_0 = arith.constant 0 : i32
    %c0_i32_1 = arith.constant 0 : i32
    return %c0_i32, %c0_i32_0 : i32, i32
  }
  func.func @transform_2(%arg0: i32) -> (i32, i32) {
    %c0_i32 = arith.constant 0 : i32
    %c0_i32_0 = arith.constant 0 : i32
    %c0_i32_1 = arith.constant 0 : i32
    return %c0_i32, %c0_i32_0 : i32, i32
  }
  func.func @transform_3(%arg0: i32) -> (i32, i32) {
    %c0_i32 = arith.constant 0 : i32
    %c0_i32_0 = arith.constant 0 : i32
    return %arg0, %c0_i32 : i32, i32
  }
}

</mosaic_0001>

<bundles_post_ra>
// kernel: _forward_pallas_unfused.1
= control target key start
LH: loop header
LB: loop body
LE: loop exit
PB: predicated region body
PF: predicated region fallthrough
CT: control target
= control target key end

     0   :  { %vm79_vm0 = vcmask 1042432   ;;  %s365_s0 = inlined_call_operand.vmem [shape: bf16[2,379], index: 0, kind: input, shape index: {}]   ;;  %s366_s1 = inlined_call_operand.vmem [shape: f32[379,4], index: 1, kind: input, shape index: {}]   ;;  %s367_s2 = inlined_call_operand.vmem [shape: f32[1,4], index: 2, kind: input, shape index: {}]   ;;  %s368_s3 = inlined_call_operand.hbm [shape: f32[2,4], index: 3, kind: output, shape index: {}]  }
   0x1   :  { %v64_v0 = vld [vmem:[%s366_s1 + $0x178] sm:$0x7]  ;;  %v63_v2 = vld [vmem:[%s366_s1 + $0x170] sm:$0xff]  ;;  %v62_v5 = vld [vmem:[%s366_s1 + $0x168] sm:$0xff] }
   0x2   :  { %v32_v1 = vld [vmem:[%s366_s1 + $0x78] sm:$0xff]  ;;  %161 = vmatpush.msk.msra.mxu2 %vm79_vm0, %v64_v0  ;;  %v31_v3 = vld [vmem:[%s366_s1 + $0x70] sm:$0xff]  ;;  %v30_v6 = vld [vmem:[%s366_s1 + $0x68] sm:$0xff] }
   0x3   :  { %83 = vmatpush.msra.mxu0 %v32_v1  ;;  %v48_v4 = vld [vmem:[%s366_s1 + $0xf8] sm:$0xff]  ;;  %v47_v7 = vld [vmem:[%s366_s1 + $0xf0] sm:$0xff]  ;;  %v46_v8 = vld [vmem:[%s366_s1 + $0xe8] sm:$0xff] }
   0x4   :  { %103 = vmatpush.msra.mxu1 %v48_v4  ;;  %124 = vmatpush.msra.mxu2 %v63_v2  ;;  %v61_v9 = vld [vmem:[%s366_s1 + $0x160] sm:$0xff]  ;;  %v60_v12 = vld [vmem:[%s366_s1 + $0x158] sm:$0xff]  ;;  %v59_v15 = vld [vmem:[%s366_s1 + $0x150] sm:$0xff] }
   0x5   :  { %84 = vmatpush.msra.mxu0 %v31_v3  ;;  %v29_v10 = vld [vmem:[%s366_s1 + $0x60] sm:$0xff]  ;;  %v28_v13 = vld [vmem:[%s366_s1 + $0x58] sm:$0xff]  ;;  %v27_v16 = vld [vmem:[%s366_s1 + $0x50] sm:$0xff] }
   0x6   :  { %104 = vmatpush.msra.mxu1 %v47_v7  ;;  %125 = vmatpush.msra.mxu2 %v62_v5  ;;  %v45_v11 = vld [vmem:[%s366_s1 + $0xe0] sm:$0xff]  ;;  %v44_v14 = vld [vmem:[%s366_s1 + $0xd8] sm:$0xff]  ;;  %v43_v17 = vld [vmem:[%s366_s1 + $0xd0] sm:$0xff] }
   0x7   :  { %85 = vmatpush.msra.mxu0 %v30_v6  ;;  %v58_v18 = vld [vmem:[%s366_s1 + $0x148] sm:$0xff]  ;;  %v57_v21 = vld [vmem:[%s366_s1 + $0x140] sm:$0xff]  ;;  %v56_v24 = vld [vmem:[%s366_s1 + $0x138] sm:$0xff] }
   0x8   :  { %105 = vmatpush.msra.mxu1 %v46_v8  ;;  %126 = vmatpush.msra.mxu2 %v61_v9  ;;  %v26_v19 = vld [vmem:[%s366_s1 + $0x48] sm:$0xff]  ;;  %v25_v22 = vld [vmem:[%s366_s1 + $0x40] sm:$0xff]  ;;  %v24_v25 = vld [vmem:[%s366_s1 + $0x38] sm:$0xff] }
   0x9   :  { %86 = vmatpush.msra.mxu0 %v29_v10  ;;  %v42_v20 = vld [vmem:[%s366_s1 + $0xc8] sm:$0xff]  ;;  %v41_v23 = vld [vmem:[%s366_s1 + $0xc0] sm:$0xff]  ;;  %v40_v26 = vld [vmem:[%s366_s1 + $0xb8] sm:$0xff] }
   0xa   :  { %106 = vmatpush.msra.mxu1 %v45_v11  ;;  %127 = vmatpush.msra.mxu2 %v60_v12  ;;  %v15_v27 = vld [vmem:[%s365_s0] sm:$0x7]  ;;  %v55_v28 = vld [vmem:[%s366_s1 + $0x130] sm:$0xff] }
   0xb   :  { %87 = vmatpush.msra.mxu0 %v28_v13  ;;  %v23_v29 = vld [vmem:[%s366_s1 + $0x30] sm:$0xff]  ;;  %v16_v30 = vunpack.c.l.bf16 %v15_v27 }
   0xc   :  { %107 = vmatpush.msra.mxu1 %v44_v14  ;;  %128 = vmatpush.msra.mxu2 %v59_v15  ;;  %v39_v31 = vld [vmem:[%s366_s1 + $0xb0] sm:$0xff] }
   0xd   :  { %88 = vmatpush.msra.mxu0 %v27_v16 }
   0xe   :  { %108 = vmatpush.msra.mxu1 %v43_v17  ;;  %129 = vmatpush.msra.mxu2 %v58_v18 }
   0xf   :  { %89 = vmatpush.msra.mxu0 %v26_v19 }
  0x10   :  { %109 = vmatpush.msra.mxu1 %v42_v20  ;;  %130 = vmatpush.msra.mxu2 %v57_v21 }
  0x11   :  { %90 = vmatpush.msra.mxu0 %v25_v22 }
  0x12   :  { %110 = vmatpush.msra.mxu1 %v41_v23  ;;  %131 = vmatpush.msra.mxu2 %v56_v24 }
  0x13   :  { %91 = vmatpush.msra.mxu0 %v24_v25 }
  0x14   :  { %8 = vsyncpa [#allocation3], 0  ;;  %111 = vmatpush.msra.mxu1 %v40_v26  ;;  %v54_v32 = vld [vmem:[%s366_s1 + $0x128] sm:$0xff]  ;;  %70 = vst [vmem:[#allocation1] ss:$4 sm:$0xff] %v16_v30  ;;  %132 = vmatpush.msra.mxu2 %v55_v28  ;;  %v53_v35 = vld [vmem:[%s366_s1 + $0x120] sm:$0xff] }
  0x15   :  { %v22_v33 = vld [vmem:[%s366_s1 + $0x28] sm:$0xff]  ;;  %92 = vmatpush.msra.mxu0 %v23_v29  ;;  %v21_v36 = vld [vmem:[%s366_s1 + $0x20] sm:$0xff]  ;;  %v52_v38 = vld [vmem:[%s366_s1 + $0x118] sm:$0xff]  ;;  %vm76_vm1 = vcmask 1006592   ;;  %s191_s29 = smov [#allocation2]   ;;  %vm143_vm2 = vcmask 25600  }
  0x16   :  { %v38_v34 = vld [vmem:[%s366_s1 + $0xa8] sm:$0xff]  ;;  %112 = vmatpush.msra.mxu1 %v39_v31  ;;  %133 = vmatpush.msra.mxu2 %v54_v32  ;;  %v37_v37 = vld [vmem:[%s366_s1 + $0xa0] sm:$0xff]  ;;  %v20_v39 = vld [vmem:[%s366_s1 + $0x18] sm:$0xff]  ;;  %s150_s30 = sshll.u32 %s191_s29, 4  ;;  %s151_s30 = int_to_ptr.vmem [resolvable:$true] %s150_s30 }
  0x17   :  { %93 = vmatpush.msra.mxu0 %v22_v33  ;;  %v36_v40 = vld [vmem:[%s366_s1 + $0x98] sm:$0xff]  ;;  %v51_v41 = vld [vmem:[%s366_s1 + $0x110] sm:$0xff]  ;;  %v50_v44 = vld [vmem:[%s366_s1 + $0x108] sm:$0xff] }
  0x18   :  { %113 = vmatpush.msra.mxu1 %v38_v34  ;;  %134 = vmatpush.msra.mxu2 %v53_v35  ;;  %v19_v42 = vld [vmem:[%s366_s1 + $0x10] sm:$0xff]  ;;  %v18_v45 = vld [vmem:[%s366_s1 + $0x8] sm:$0xff]  ;;  %v49_v47 = vld [vmem:[%s366_s1 + $0x100] sm:$0xff] }
  0x19   :  { %94 = vmatpush.msra.mxu0 %v21_v36  ;;  %v35_v43 = vld [vmem:[%s366_s1 + $0x90] sm:$0xff]  ;;  %v34_v46 = vld [vmem:[%s366_s1 + $0x88] sm:$0xff]  ;;  %v17_v48 = vld [vmem:[%s366_s1] sm:$0xff] }
  0x1a   :  { %114 = vmatpush.msra.mxu1 %v37_v37  ;;  %135 = vmatpush.msra.mxu2 %v52_v38  ;;  %v33_v51 = vld [vmem:[%s366_s1 + $0x80] sm:$0xff]  ;;  %s152_s1 = sshll.u32 %s368_s3, 4  ;;  %s153_s1 = int_to_ptr.hbm [resolvable:$true] %s152_s1 }
  0x1b   :  { %95 = vmatpush.msra.mxu0 %v20_v39  ;;  %v73_v49 = vld.sshfl [vmem:[#allocation1 + $0x10] sm:$0xff pattern:$0x73625140]  ;;  %v71_v50 = vld.sshfl [vmem:[#allocation1] sm:$0xff pattern:$0x73625140] }
  0x1c   :  { %115 = vmatpush.msra.mxu1 %v36_v40  ;;  %136 = vmatpush.msra.mxu2 %v51_v41  ;;  %v72_v52 = vld.sshfl [vmem:[#allocation1 + $0x8] sm:$0xff pattern:$0x73625140]  ;;  %v164_v53 = vld [vmem:[%s367_s2] ss:$0 sm:$0xff] }
  0x1d   :  { %96 = vmatpush.msra.mxu0 %v19_v42 }
  0x1e   :  { %116 = vmatpush.msra.mxu1 %v35_v43  ;;  %137 = vmatpush.msra.mxu2 %v50_v44 }
  0x1f   :  { %97 = vmatpush.msra.mxu0 %v18_v45 }
  0x20   :  { %117 = vmatpush.msra.mxu1 %v34_v46  ;;  %138 = vmatpush.msra.mxu2 %v49_v47 }
  0x21   :  { %98 = vmatpush.msra.mxu0 %v17_v48  ;;  %162 = vmatmul.msk.f32.vlgmr.msra.gmra.mxu2 %vm76_vm1, %v73_v49 }
  0x22   :  { %99 = vmatmul.f32.vlgmr.msra.gmra.mxu0 %v71_v50  ;;  %118 = vmatpush.msra.mxu1 %v33_v51 }
  0x23   :  { %119 = vmatmul.f32.vlgmr.msra.gmra.mxu1 %v72_v52 }
  0x9f   :  { %v100_v54 = vpop.f32.mrf.mxu0 }
  0xa0   :  { %v101_v55 = vadd.f32 %v164_v53, %v100_v54  ;;  %v120_v56 = vpop.f32.mrf.mxu1 }
  0xa2   :  { %v121_v57 = vadd.f32 %v120_v56, %v101_v55 }
  0xa4   :  { %v140_v58 = vpop.f32.mrf.mxu2 }
  0xa5   :  { %v141_v59 = vadd.f32 %v140_v58, %v121_v57 }
  0xa7   :  { %144 = vst.msk [vmem:[#allocation2] sm:$0x3] %vm143_vm2, %v141_v59 }
  0xa8   :  { %155 = dma.vmem_to_hbm [thread:$0]  %s151_s30, 32, %s153_s1, [#allocation3]  }
  0xa9   :  { %189 = dma.done.wait [#allocation3], 32  }
  0xaa   :  { %190 = vsyncadd [#allocation3], 4294967264 }
  0xab   :  { %160 = vsyncpa [#allocation3], 1 }

</bundles_post_ra>
